<compile_context>
chip_gen: v5e
topology: v5e:2x2
jax: 0.10.0
libtpu: 0.0.40
codegen_flags: <defaults>
</compile_context>

<pallas_src>
import jax
import jax.numpy as jnp
from jax import lax
from jax.experimental import pallas as pl
from jax.experimental.pallas import tpu as pltpu


_PAD = 128  # lane-dense feature width (one full vreg lane dimension)

# Row layout of the packed (8, _PAD) bias/gamma/beta slab.
_B1, _B2, _G2, _BE2, _B3, _G3, _BE3, _B4 = range(8)


def _leaky_relu(x, slope=0.2):
    return jnp.where(x > 0, x, slope * x)


def _batchnorm_fused(x, gamma, beta, eps=0.8):
    """Training-mode BN with fused sum / sum-of-squares (biased variance)."""
    inv_n = 1.0 / x.shape[0]
    s = jnp.sum(x, axis=0, keepdims=True)
    ssq = jnp.sum(x * x, axis=0, keepdims=True)
    mean = s * inv_n
    var = jnp.maximum(ssq * inv_n - mean * mean, 0.0)
    return (x - mean) * lax.rsqrt(var + eps) * gamma + beta


def generator_kernel(z_ref, w_ref, vec_ref, out_ref):
    z = z_ref[...]

    def row(i):
        # (1, _PAD) slice of the packed bias/gamma/beta slab; broadcasts over batch.
        return vec_ref[i:i + 1, :]

    # block(C, C/2, normalize=False): Linear + LeakyReLU
    h = jnp.dot(z, w_ref[0], preferred_element_type=jnp.float32) + row(_B1)
    h = _leaky_relu(h)

    # block(C/2, C/4): Linear + BatchNorm1d(eps=0.8) + LeakyReLU
    h = jnp.dot(h, w_ref[1], preferred_element_type=jnp.float32) + row(_B2)
    h = _leaky_relu(_batchnorm_fused(h, row(_G2), row(_BE2)))

    # block(C/4, C/2): Linear + BatchNorm1d(eps=0.8) + LeakyReLU
    h = jnp.dot(h, w_ref[2], preferred_element_type=jnp.float32) + row(_B3)
    h = _leaky_relu(_batchnorm_fused(h, row(_G3), row(_BE3)))

    # Linear(C/2, C) + Tanh
    h = jnp.dot(h, w_ref[3], preferred_element_type=jnp.float32) + row(_B4)
    out_ref[...] = jnp.tanh(h)


def generator_forward(z, packed_params):
    """z: (N, C) float32; packed_params: (w_all (4,128,128), vec_all (8,128))."""
    w_all, vec_all = packed_params
    n, c = z.shape
    # Layout plumbing only: present a lane-dense (N, 128) slab to the kernel.
    z_pad = jnp.zeros((n, _PAD), jnp.float32).at[:, :c].set(z)

    vmem = pl.BlockSpec(memory_space=pltpu.MemorySpace.VMEM)
    out_pad = pl.pallas_call(
        generator_kernel,
        out_shape=jax.ShapeDtypeStruct((n, _PAD), jnp.float32),
        in_specs=[vmem, vmem, vmem],
        out_specs=vmem,
    )(z_pad, w_all, vec_all)
    return out_pad[:, :c]


def init_params(key, channels):
    """PyTorch Linear default init (uniform +-1/sqrt(fan_in)); weights stored
    transposed as (in_features, out_features). BN gamma=1, beta=0."""
    c = channels
    dims = [(c, c // 2), (c // 2, c // 4), (c // 4, c // 2), (c // 2, c)]
    keys = jax.random.split(key, 2 * len(dims))
    ws, bs = [], []
    for i, (fan_in, fan_out) in enumerate(dims):
        bound = 1.0 / jnp.sqrt(float(fan_in))
        ws.append(jax.random.uniform(keys[2 * i], (fan_in, fan_out),
                                     jnp.float32, -bound, bound))
        bs.append(jax.random.uniform(keys[2 * i + 1], (1, fan_out),
                                     jnp.float32, -bound, bound))
    g2 = jnp.ones((1, c // 4), jnp.float32)
    be2 = jnp.zeros((1, c // 4), jnp.float32)
    g3 = jnp.ones((1, c // 2), jnp.float32)
    be3 = jnp.zeros((1, c // 2), jnp.float32)
    return (ws[0], bs[0], ws[1], bs[1], g2, be2,
            ws[2], bs[2], g3, be3, ws[3], bs[3])


def pack_params(params):
    """Zero-pad to lane-dense width 128 and pack into two slabs (3 input DMAs)."""
    (w1, b1, w2, b2, g2, be2, w3, b3, g3, be3, w4, b4) = params

    def pad_w(w):
        return (jnp.zeros((_PAD, _PAD), jnp.float32)
                .at[:w.shape[0], :w.shape[1]].set(w))

    def pad_v(v):
        return jnp.zeros((_PAD,), jnp.float32).at[:v.shape[1]].set(v[0])

    w_all = jnp.stack([pad_w(w1), pad_w(w2), pad_w(w3), pad_w(w4)])
    vec_all = jnp.stack([pad_v(b1), pad_v(b2), pad_v(g2), pad_v(be2),
                         pad_v(b3), pad_v(g3), pad_v(be3), pad_v(b4)])
    return w_all, vec_all


def _batchnorm_ref(x, gamma, beta, eps=0.8):
    mean = jnp.mean(x, axis=0, keepdims=True)
    var = jnp.mean((x - mean) ** 2, axis=0, keepdims=True)  # biased variance
    return (x - mean) * lax.rsqrt(var + eps) * gamma + beta


def reference_forward(z, params):
    (w1, b1, w2, b2, g2, be2, w3, b3, g3, be3, w4, b4) = params
    h = _leaky_relu(z @ w1 + b1)
    h = _leaky_relu(_batchnorm_ref(h @ w2 + b2, g2, be2))
    h = _leaky_relu(_batchnorm_ref(h @ w3 + b3, g3, be3))
    return jnp.tanh(h @ w4 + b4)


if __name__ == "__main__":
    CHANNELS = 32   # args.channels
    BATCH = 8

    key = jax.random.PRNGKey(0)
    k_z, k_p = jax.random.split(key)
    z = jax.random.normal(k_z, (BATCH, CHANNELS), dtype=jnp.float32)
    params = init_params(k_p, CHANNELS)
    packed = pack_params(params)

    out = generator_forward(z, packed)
    out = jax.block_until_ready(out)

    ref = reference_forward(z, params)
    assert out.shape == (BATCH, CHANNELS)
    assert jnp.allclose(out, ref, atol=1e-5, rtol=1e-5)

    print("KERNEL_OK")
</pallas_src>

<mosaic_0001>
module attributes {stable_mosaic.version = 11 : i64} {
  func.func @generator_kernel(%arg0: memref<8x128xf32, #tpu.memory_space<vmem>>, %arg1: memref<4x128x128xf32, #tpu.memory_space<vmem>>, %arg2: memref<8x128xf32, #tpu.memory_space<vmem>>, %arg3: memref<8x128xf32, #tpu.memory_space<vmem>>) attributes {dimension_semantics = [], scalar_prefetch = 0 : i64, scratch_operands = 0 : i64, tpu.core_type = #tpu.core_type<tc>} {
    %c0 = arith.constant 0 : index
    %c0_0 = arith.constant 0 : index
    %0 = vector.load %arg0[%c0, %c0_0] : memref<8x128xf32, #tpu.memory_space<vmem>>, vector<8x128xf32>
    %c0_1 = arith.constant 0 : index
    %c0_2 = arith.constant 0 : index
    %c0_3 = arith.constant 0 : index
    %1 = vector.load %arg1[%c0_1, %c0_2, %c0_3] : memref<4x128x128xf32, #tpu.memory_space<vmem>>, vector<1x128x128xf32>
    %2 = vector.shape_cast %1 : vector<1x128x128xf32> to vector<128x128xf32>
    %cst = arith.constant dense<0.000000e+00> : vector<8x128xf32>
    %3 = tpu.matmul %0, %2, %cst {dimension_numbers = #tpu.dot_dimension_numbers<[1], [0], [0], [1], [0, 0, 1, 1], [], []>} : vector<8x128xf32>, vector<128x128xf32>, vector<8x128xf32> -> vector<8x128xf32>
    %c0_4 = arith.constant 0 : index
    %c0_5 = arith.constant 0 : index
    %4 = vector.load %arg2[%c0_4, %c0_5] : memref<8x128xf32, #tpu.memory_space<vmem>>, vector<1x128xf32>
    %5 = vector.broadcast %4 : vector<1x128xf32> to vector<8x128xf32>
    %6 = arith.addf %3, %5 : vector<8x128xf32>
    %cst_6 = arith.constant 0.000000e+00 : f32
    %7 = vector.broadcast %cst_6 : f32 to vector<8x128xf32>
    %8 = arith.cmpf ogt, %6, %7 : vector<8x128xf32>
    %cst_7 = arith.constant 2.000000e-01 : f32
    %9 = vector.broadcast %cst_7 : f32 to vector<8x128xf32>
    %10 = arith.mulf %9, %6 : vector<8x128xf32>
    %11 = arith.select %8, %6, %10 : vector<8x128xi1>, vector<8x128xf32>
    %c1 = arith.constant 1 : index
    %c0_8 = arith.constant 0 : index
    %c0_9 = arith.constant 0 : index
    %12 = vector.load %arg1[%c1, %c0_8, %c0_9] : memref<4x128x128xf32, #tpu.memory_space<vmem>>, vector<1x128x128xf32>
    %13 = vector.shape_cast %12 : vector<1x128x128xf32> to vector<128x128xf32>
    %cst_10 = arith.constant dense<0.000000e+00> : vector<8x128xf32>
    %14 = tpu.matmul %11, %13, %cst_10 {dimension_numbers = #tpu.dot_dimension_numbers<[1], [0], [0], [1], [0, 0, 1, 1], [], []>} : vector<8x128xf32>, vector<128x128xf32>, vector<8x128xf32> -> vector<8x128xf32>
    %c1_11 = arith.constant 1 : index
    %c0_12 = arith.constant 0 : index
    %15 = vector.load %arg2[%c1_11, %c0_12] : memref<8x128xf32, #tpu.memory_space<vmem>>, vector<1x128xf32>
    %16 = vector.broadcast %15 : vector<1x128xf32> to vector<8x128xf32>
    %17 = arith.addf %14, %16 : vector<8x128xf32>
    %c2 = arith.constant 2 : index
    %c0_13 = arith.constant 0 : index
    %18 = vector.load %arg2[%c2, %c0_13] : memref<8x128xf32, #tpu.memory_space<vmem>>, vector<1x128xf32>
    %c3 = arith.constant 3 : index
    %c0_14 = arith.constant 0 : index
    %19 = vector.load %arg2[%c3, %c0_14] : memref<8x128xf32, #tpu.memory_space<vmem>>, vector<1x128xf32>
    %cst_15 = arith.constant dense<0.000000e+00> : vector<128xf32>
    %20 = vector.multi_reduction <add>, %17, %cst_15 [0] : vector<8x128xf32> to vector<128xf32>
    %21 = vector.shape_cast %20 : vector<128xf32> to vector<1x128xf32>
    %22 = arith.mulf %17, %17 : vector<8x128xf32>
    %cst_16 = arith.constant dense<0.000000e+00> : vector<128xf32>
    %23 = vector.multi_reduction <add>, %22, %cst_16 [0] : vector<8x128xf32> to vector<128xf32>
    %24 = vector.shape_cast %23 : vector<128xf32> to vector<1x128xf32>
    %cst_17 = arith.constant 1.250000e-01 : f32
    %25 = vector.broadcast %cst_17 : f32 to vector<1x128xf32>
    %26 = arith.mulf %21, %25 : vector<1x128xf32>
    %cst_18 = arith.constant 1.250000e-01 : f32
    %27 = vector.broadcast %cst_18 : f32 to vector<1x128xf32>
    %28 = arith.mulf %24, %27 : vector<1x128xf32>
    %29 = arith.mulf %26, %26 : vector<1x128xf32>
    %30 = arith.subf %28, %29 : vector<1x128xf32>
    %cst_19 = arith.constant 0.000000e+00 : f32
    %31 = vector.broadcast %cst_19 : f32 to vector<1x128xf32>
    %32 = arith.maximumf %30, %31 : vector<1x128xf32>
    %33 = vector.broadcast %26 : vector<1x128xf32> to vector<8x128xf32>
    %34 = arith.subf %17, %33 : vector<8x128xf32>
    %cst_20 = arith.constant 8.000000e-01 : f32
    %35 = vector.broadcast %cst_20 : f32 to vector<1x128xf32>
    %36 = arith.addf %32, %35 : vector<1x128xf32>
    %37 = math.rsqrt %36 : vector<1x128xf32>
    %38 = vector.broadcast %37 : vector<1x128xf32> to vector<8x128xf32>
    %39 = arith.mulf %34, %38 : vector<8x128xf32>
    %40 = vector.broadcast %18 : vector<1x128xf32> to vector<8x128xf32>
    %41 = arith.mulf %39, %40 : vector<8x128xf32>
    %42 = vector.broadcast %19 : vector<1x128xf32> to vector<8x128xf32>
    %43 = arith.addf %41, %42 : vector<8x128xf32>
    %cst_21 = arith.constant 0.000000e+00 : f32
    %44 = vector.broadcast %cst_21 : f32 to vector<8x128xf32>
    %45 = arith.cmpf ogt, %43, %44 : vector<8x128xf32>
    %cst_22 = arith.constant 2.000000e-01 : f32
    %46 = vector.broadcast %cst_22 : f32 to vector<8x128xf32>
    %47 = arith.mulf %46, %43 : vector<8x128xf32>
    %48 = arith.select %45, %43, %47 : vector<8x128xi1>, vector<8x128xf32>
    %c2_23 = arith.constant 2 : index
    %c0_24 = arith.constant 0 : index
    %c0_25 = arith.constant 0 : index
    %49 = vector.load %arg1[%c2_23, %c0_24, %c0_25] : memref<4x128x128xf32, #tpu.memory_space<vmem>>, vector<1x128x128xf32>
    %50 = vector.shape_cast %49 : vector<1x128x128xf32> to vector<128x128xf32>
    %cst_26 = arith.constant dense<0.000000e+00> : vector<8x128xf32>
    %51 = tpu.matmul %48, %50, %cst_26 {dimension_numbers = #tpu.dot_dimension_numbers<[1], [0], [0], [1], [0, 0, 1, 1], [], []>} : vector<8x128xf32>, vector<128x128xf32>, vector<8x128xf32> -> vector<8x128xf32>
    %c4 = arith.constant 4 : index
    %c0_27 = arith.constant 0 : index
    %52 = vector.load %arg2[%c4, %c0_27] : memref<8x128xf32, #tpu.memory_space<vmem>>, vector<1x128xf32>
    %53 = vector.broadcast %52 : vector<1x128xf32> to vector<8x128xf32>
    %54 = arith.addf %51, %53 : vector<8x128xf32>
    %c5 = arith.constant 5 : index
    %c0_28 = arith.constant 0 : index
    %55 = vector.load %arg2[%c5, %c0_28] : memref<8x128xf32, #tpu.memory_space<vmem>>, vector<1x128xf32>
    %c6 = arith.constant 6 : index
    %c0_29 = arith.constant 0 : index
    %56 = vector.load %arg2[%c6, %c0_29] : memref<8x128xf32, #tpu.memory_space<vmem>>, vector<1x128xf32>
    %cst_30 = arith.constant dense<0.000000e+00> : vector<128xf32>
    %57 = vector.multi_reduction <add>, %54, %cst_30 [0] : vector<8x128xf32> to vector<128xf32>
    %58 = vector.shape_cast %57 : vector<128xf32> to vector<1x128xf32>
    %59 = arith.mulf %54, %54 : vector<8x128xf32>
    %cst_31 = arith.constant dense<0.000000e+00> : vector<128xf32>
    %60 = vector.multi_reduction <add>, %59, %cst_31 [0] : vector<8x128xf32> to vector<128xf32>
    %61 = vector.shape_cast %60 : vector<128xf32> to vector<1x128xf32>
    %cst_32 = arith.constant 1.250000e-01 : f32
    %62 = vector.broadcast %cst_32 : f32 to vector<1x128xf32>
    %63 = arith.mulf %58, %62 : vector<1x128xf32>
    %cst_33 = arith.constant 1.250000e-01 : f32
    %64 = vector.broadcast %cst_33 : f32 to vector<1x128xf32>
    %65 = arith.mulf %61, %64 : vector<1x128xf32>
    %66 = arith.mulf %63, %63 : vector<1x128xf32>
    %67 = arith.subf %65, %66 : vector<1x128xf32>
    %cst_34 = arith.constant 0.000000e+00 : f32
    %68 = vector.broadcast %cst_34 : f32 to vector<1x128xf32>
    %69 = arith.maximumf %67, %68 : vector<1x128xf32>
    %70 = vector.broadcast %63 : vector<1x128xf32> to vector<8x128xf32>
    %71 = arith.subf %54, %70 : vector<8x128xf32>
    %cst_35 = arith.constant 8.000000e-01 : f32
    %72 = vector.broadcast %cst_35 : f32 to vector<1x128xf32>
    %73 = arith.addf %69, %72 : vector<1x128xf32>
    %74 = math.rsqrt %73 : vector<1x128xf32>
    %75 = vector.broadcast %74 : vector<1x128xf32> to vector<8x128xf32>
    %76 = arith.mulf %71, %75 : vector<8x128xf32>
    %77 = vector.broadcast %55 : vector<1x128xf32> to vector<8x128xf32>
    %78 = arith.mulf %76, %77 : vector<8x128xf32>
    %79 = vector.broadcast %56 : vector<1x128xf32> to vector<8x128xf32>
    %80 = arith.addf %78, %79 : vector<8x128xf32>
    %cst_36 = arith.constant 0.000000e+00 : f32
    %81 = vector.broadcast %cst_36 : f32 to vector<8x128xf32>
    %82 = arith.cmpf ogt, %80, %81 : vector<8x128xf32>
    %cst_37 = arith.constant 2.000000e-01 : f32
    %83 = vector.broadcast %cst_37 : f32 to vector<8x128xf32>
    %84 = arith.mulf %83, %80 : vector<8x128xf32>
    %85 = arith.select %82, %80, %84 : vector<8x128xi1>, vector<8x128xf32>
    %c3_38 = arith.constant 3 : index
    %c0_39 = arith.constant 0 : index
    %c0_40 = arith.constant 0 : index
    %86 = vector.load %arg1[%c3_38, %c0_39, %c0_40] : memref<4x128x128xf32, #tpu.memory_space<vmem>>, vector<1x128x128xf32>
    %87 = vector.shape_cast %86 : vector<1x128x128xf32> to vector<128x128xf32>
    %cst_41 = arith.constant dense<0.000000e+00> : vector<8x128xf32>
    %88 = tpu.matmul %85, %87, %cst_41 {dimension_numbers = #tpu.dot_dimension_numbers<[1], [0], [0], [1], [0, 0, 1, 1], [], []>} : vector<8x128xf32>, vector<128x128xf32>, vector<8x128xf32> -> vector<8x128xf32>
    %c7 = arith.constant 7 : index
    %c0_42 = arith.constant 0 : index
    %89 = vector.load %arg2[%c7, %c0_42] : memref<8x128xf32, #tpu.memory_space<vmem>>, vector<1x128xf32>
    %90 = vector.broadcast %89 : vector<1x128xf32> to vector<8x128xf32>
    %91 = arith.addf %88, %90 : vector<8x128xf32>
    %92 = math.tanh %91 : vector<8x128xf32>
    %c0_43 = arith.constant 0 : index
    %c0_44 = arith.constant 0 : index
    %93 = vector.load %arg3[%c0_43, %c0_44] : memref<8x128xf32, #tpu.memory_space<vmem>>, vector<8x128xf32>
    tpu.vector_store %arg3[%c0_43, %c0_44], %92 {strides = array<i32>} : memref<8x128xf32, #tpu.memory_space<vmem>>, vector<8x128xf32>,
    return
  }
}

</mosaic_0001>

<bundles_post_ra>
// kernel: tpu_custom_call.1
= control target key start
LH: loop header
LB: loop body
LE: loop exit
PB: predicated region body
PF: predicated region fallthrough
CT: control target
= control target key end

     0   :  { %8 = vsyncpa [#allocation3], 0  ;;  %s477_s0 = inlined_call_operand.hbm [shape: f32[8,128], index: 0, kind: input, shape index: {}]   ;;  %s478_s1 = inlined_call_operand.hbm [shape: f32[4,128,128], index: 1, kind: input, shape index: {}]   ;;  %s479_s2 = inlined_call_operand.hbm [shape: f32[8,128], index: 2, kind: input, shape index: {}]   ;;  %s480_s3 = inlined_call_operand.hbm [shape: f32[8,128], index: 3, kind: output, shape index: {}]  }
   0x1   :  { %9 = vsyncpa [#allocation6], 0  ;;  %s26_s14 = sshll.u32 %s478_s1, 4  ;;  %s27_s14 = int_to_ptr.hbm [resolvable:$true] %s26_s14 }
   0x2   :  { %10 = vsyncpa [#allocation4], 0  ;;  %s439_s15 = smov [#allocation5]   ;;  %s16_s19 = sshll.u32 %s477_s0, 4  ;;  %s17_s19 = int_to_ptr.hbm [resolvable:$true] %s16_s19 }
   0x3   :  { %s28_s16 = sshll.u32 %s439_s15, 4  ;;  %s440_s20 = smov 128   ;;  %s29_s16 = int_to_ptr.vmem [resolvable:$true] %s28_s16 }
   0x4   :  { %s441_s21 = smov 8   ;;  %s442_s22 = smov [#allocation2]  }
   0x5   :  { %34 = dma.hbm_to_vmem [thread:$0]  %s27_s14, 8192, %s29_s16, [#allocation6], %s440_s20, %s440_s20, %s441_s21  }
   0x6   :  { %s18_s23 = sshll.u32 %s442_s22, 4  ;;  %s40_s26 = sshll.u32 %s479_s2, 4  ;;  %s19_s23 = int_to_ptr.vmem [resolvable:$true] %s18_s23  ;;  %s41_s26 = int_to_ptr.hbm [resolvable:$true] %s40_s26 }
   0x7   :  { %21 = dma.hbm_to_vmem [thread:$0]  %s17_s19, 128, %s19_s23, [#allocation3]  }
   0x8   :  { %s443_s1 = smov [#allocation7]  }
   0x9   :  { %s42_s27 = sshll.u32 %s443_s1, 4  ;;  %s43_s27 = int_to_ptr.vmem [resolvable:$true] %s42_s27 }
   0xa   :  { %45 = dma.hbm_to_vmem [thread:$0]  %s41_s26, 128, %s43_s27, [#allocation6]  }
   0xb   :  { %433 = dma.done.wait [#allocation3], 128  }
   0xc   :  { %434 = vsyncadd [#allocation3], 4294967168 }
   0xd   :  { %435 = dma.done.wait [#allocation6], 8320  }
   0xe   :  { %436 = vsyncadd [#allocation6], 4294958976  ;;  %v74_v0 = vld [vmem:[#allocation5 + $0x78] sm:$0xff]  ;;  %v73_v1 = vld [vmem:[#allocation5 + $0x70] sm:$0xff]  ;;  %s444_s0 = smov [#allocation8]   ;;  %s306_s30 = sshll.u32 %s480_s3, 4  ;;  %s307_s30 = int_to_ptr.hbm [resolvable:$true] %s306_s30 }
   0xf   :  { %77 = vmatpush.msra.mxu0 %v74_v0  ;;  %v72_v2 = vld [vmem:[#allocation5 + $0x68] sm:$0xff]  ;;  %v71_v3 = vld [vmem:[#allocation5 + $0x60] sm:$0xff]  ;;  %v116_v4 = vld [vmem:[#allocation5 + $0xf8] sm:$0xff]  ;;  %s304_s2 = sshll.u32 %s444_s0, 4  ;;  %s305_s2 = int_to_ptr.vmem [resolvable:$true] %s304_s2 }
  0x10   :  { %v70_v5 = vld [vmem:[#allocation5 + $0x58] sm:$0xff]  ;;  %119 = vmatpush.msra.mxu1 %v116_v4  ;;  %v115_v6 = vld [vmem:[#allocation5 + $0xf0] sm:$0xff]  ;;  %v114_v7 = vld [vmem:[#allocation5 + $0xe8] sm:$0xff] }
  0x11   :  { %78 = vmatpush.msra.mxu0 %v73_v1  ;;  %v69_v8 = vld [vmem:[#allocation5 + $0x50] sm:$0xff]  ;;  %v68_v9 = vld [vmem:[#allocation5 + $0x48] sm:$0xff]  ;;  %v113_v10 = vld [vmem:[#allocation5 + $0xe0] sm:$0xff] }
  0x12   :  { %120 = vmatpush.msra.mxu1 %v115_v6  ;;  %v67_v11 = vld [vmem:[#allocation5 + $0x40] sm:$0xff]  ;;  %v112_v12 = vld [vmem:[#allocation5 + $0xd8] sm:$0xff]  ;;  %v111_v13 = vld [vmem:[#allocation5 + $0xd0] sm:$0xff] }
  0x13   :  { %79 = vmatpush.msra.mxu0 %v72_v2  ;;  %v66_v14 = vld [vmem:[#allocation5 + $0x38] sm:$0xff]  ;;  %v110_v15 = vld [vmem:[#allocation5 + $0xc8] sm:$0xff]  ;;  %v65_v16 = vld [vmem:[#allocation5 + $0x30] sm:$0xff] }
  0x14   :  { %121 = vmatpush.msra.mxu1 %v114_v7  ;;  %v109_v17 = vld [vmem:[#allocation5 + $0xc0] sm:$0xff]  ;;  %v64_v18 = vld [vmem:[#allocation5 + $0x28] sm:$0xff]  ;;  %v108_v19 = vld [vmem:[#allocation5 + $0xb8] sm:$0xff] }
  0x15   :  { %80 = vmatpush.msra.mxu0 %v71_v3  ;;  %v63_v20 = vld [vmem:[#allocation5 + $0x20] sm:$0xff]  ;;  %v107_v21 = vld [vmem:[#allocation5 + $0xb0] sm:$0xff]  ;;  %v62_v22 = vld [vmem:[#allocation5 + $0x18] sm:$0xff] }
  0x16   :  { %122 = vmatpush.msra.mxu1 %v113_v10  ;;  %v106_v23 = vld [vmem:[#allocation5 + $0xa8] sm:$0xff]  ;;  %v61_v24 = vld [vmem:[#allocation5 + $0x10] sm:$0xff]  ;;  %v105_v25 = vld [vmem:[#allocation5 + $0xa0] sm:$0xff] }
  0x17   :  { %81 = vmatpush.msra.mxu0 %v70_v5  ;;  %v60_v26 = vld [vmem:[#allocation5 + $0x8] sm:$0xff]  ;;  %v104_v27 = vld [vmem:[#allocation5 + $0x98] sm:$0xff]  ;;  %v59_v28 = vld [vmem:[#allocation5] sm:$0xff] }
  0x18   :  { %123 = vmatpush.msra.mxu1 %v112_v12  ;;  %v58_v29 = vld [vmem:[#allocation2] sm:$0xff]  ;;  %v103_v30 = vld [vmem:[#allocation5 + $0x90] sm:$0xff]  ;;  %v102_v31 = vld [vmem:[#allocation5 + $0x88] sm:$0xff] }
  0x19   :  { %82 = vmatpush.msra.mxu0 %v69_v8  ;;  %v101_v32 = vld [vmem:[#allocation5 + $0x80] sm:$0xff]  ;;  %v195_v38 = vld [vmem:[#allocation5 + $0x178] sm:$0xff]  ;;  %v194_v39 = vld [vmem:[#allocation5 + $0x170] sm:$0xff] }
  0x1a   :  { %124 = vmatpush.msra.mxu1 %v111_v13  ;;  %v323_v33 = vld [vmem:[#allocation7] ss:$0 sm:$0xff]  ;;  %198 = vmatpush.msra.mxu2 %v195_v38  ;;  %v193_v40 = vld [vmem:[#allocation5 + $0x168] sm:$0xff]  ;;  %v191_v42 = vld [vmem:[#allocation5 + $0x158] sm:$0xff] }
  0x1b   :  { %83 = vmatpush.msra.mxu0 %v68_v9  ;;  %v192_v41 = vld [vmem:[#allocation5 + $0x160] sm:$0xff]  ;;  %v190_v43 = vld [vmem:[#allocation5 + $0x150] sm:$0xff]  ;;  %v189_v45 = vld [vmem:[#allocation5 + $0x148] sm:$0xff] }
  0x1c   :  { %125 = vmatpush.msra.mxu1 %v110_v15  ;;  %199 = vmatpush.msra.mxu2 %v194_v39  ;;  %v324_v44 = vld [vmem:[#allocation7 + $0x1] ss:$0 sm:$0xff]  ;;  %v187_v49 = vld [vmem:[#allocation5 + $0x138] sm:$0xff]  ;;  %v186_v52 = vld [vmem:[#allocation5 + $0x130] sm:$0xff] }
  0x1d   :  { %84 = vmatpush.msra.mxu0 %v67_v11  ;;  %v188_v47 = vld [vmem:[#allocation5 + $0x140] sm:$0xff]  ;;  %v185_v55 = vld [vmem:[#allocation5 + $0x128] sm:$0xff]  ;;  %v183_v61 = vld [vmem:[#allocation5 + $0x118] sm:$0xff] }
  0x1e   :  { %126 = vmatpush.msra.mxu1 %v109_v17  ;;  %200 = vmatpush.msra.mxu2 %v193_v40  ;;  %v184_v58 = vld [vmem:[#allocation5 + $0x120] sm:$0xff]  ;;  %v182_v0 = vld [vmem:[#allocation5 + $0x110] sm:$0xff]  ;;  %v181_v3 = vld [vmem:[#allocation5 + $0x108] sm:$0xff] }
  0x1f   :  { %85 = vmatpush.msra.mxu0 %v66_v14  ;;  %v180_v6 = vld [vmem:[#allocation5 + $0x100] sm:$0xff]  ;;  %v266_v38 = vld [vmem:[#allocation5 + $0x1b8] sm:$0xff] }
  0x20   :  { %127 = vmatpush.msra.mxu1 %v108_v19  ;;  %201 = vmatpush.msra.mxu2 %v192_v41  ;;  %v325_v19 = vld [vmem:[#allocation7 + $0x2] ss:$0 sm:$0xff]  ;;  %v265_v41 = vld [vmem:[#allocation5 + $0x1b0] sm:$0xff] }
  0x21   :  { %86 = vmatpush.msra.mxu0 %v65_v16 }
  0x22   :  { %128 = vmatpush.msra.mxu1 %v107_v21  ;;  %202 = vmatpush.msra.mxu2 %v191_v42 }
  0x23   :  { %87 = vmatpush.msra.mxu0 %v64_v18 }
  0x24   :  { %129 = vmatpush.msra.mxu1 %v106_v23  ;;  %203 = vmatpush.msra.mxu2 %v190_v43 }
  0x25   :  { %88 = vmatpush.msra.mxu0 %v63_v20 }
  0x26   :  { %130 = vmatpush.msra.mxu1 %v105_v25  ;;  %204 = vmatpush.msra.mxu2 %v189_v45 }
  0x27   :  { %89 = vmatpush.msra.mxu0 %v62_v22  ;;  %v326_v22 = vld [vmem:[#allocation7 + $0x3] ss:$0 sm:$0xff] }
  0x28   :  { %131 = vmatpush.msra.mxu1 %v104_v27  ;;  %205 = vmatpush.msra.mxu2 %v188_v47  ;;  %v274_v27 = vld [vmem:[#allocation5 + $0x1f8] sm:$0xff]  ;;  %v263_v47 = vld [vmem:[#allocation5 + $0x1a0] sm:$0xff] }
  0x29   :  { %90 = vmatpush.msra.mxu0 %v61_v24  ;;  %277 = vmatpush.msra.mxu3 %v274_v27 }
  0x2a   :  { %132 = vmatpush.msra.mxu1 %v103_v30  ;;  %206 = vmatpush.msra.mxu2 %v187_v49  ;;  %v271_v30 = vld [vmem:[#allocation5 + $0x1e0] sm:$0xff] }
  0x2b   :  { %91 = vmatpush.msra.mxu0 %v60_v26 }
  0x2c   :  { %133 = vmatpush.msra.mxu1 %v102_v31  ;;  %207 = vmatpush.msra.mxu2 %v186_v52  ;;  %v270_v31 = vld [vmem:[#allocation5 + $0x1d8] sm:$0xff] }
  0x2d   :  { %92 = vmatpush.msra.mxu0 %v59_v28  ;;  %v273_v28 = vld [vmem:[#allocation5 + $0x1f0] sm:$0xff] }
  0x2e   :  { %93 = vmatmul.f32.vlgmr.msra.gmra.mxu0 %v58_v29  ;;  %134 = vmatpush.msra.mxu1 %v101_v32  ;;  %v272_v29 = vld [vmem:[#allocation5 + $0x1e8] sm:$0xff]  ;;  %v269_v32 = vld [vmem:[#allocation5 + $0x1d0] sm:$0xff] }
  0x2f   :  { %208 = vmatpush.msra.mxu2 %v185_v55  ;;  %278 = vmatpush.msra.mxu3 %v273_v28 }
  0x31   :  { %209 = vmatpush.msra.mxu2 %v184_v58  ;;  %279 = vmatpush.msra.mxu3 %v272_v29 }
  0x33   :  { %210 = vmatpush.msra.mxu2 %v183_v61  ;;  %280 = vmatpush.msra.mxu3 %v271_v30 }
  0x35   :  { %211 = vmatpush.msra.mxu2 %v182_v0  ;;  %281 = vmatpush.msra.mxu3 %v270_v31 }
  0x37   :  { %212 = vmatpush.msra.mxu2 %v181_v3  ;;  %282 = vmatpush.msra.mxu3 %v269_v32 }
  0x39   :  { %213 = vmatpush.msra.mxu2 %v180_v6 }
  0xab   :  { %v94_v34 = vpop.f32.mrf.mxu0 }
  0xac   :  { %v95_v35 = vadd.f32 %v323_v33, %v94_v34  ;;  %v327_v33 = vld [vmem:[#allocation7 + $0x4] ss:$0 sm:$0xff]  ;;  %v268_v34 = vld [vmem:[#allocation5 + $0x1c8] sm:$0xff] }
  0xad   :  { %283 = vmatpush.msra.mxu3 %v268_v34 }
  0xae   :  { %vm97_vm0 = vcmp.gt.f32.partialorder %v95_v35, 0.0  ;;  %v98_v36 = vmul.f32 0.2, %v95_v35 }
  0xb0   :  { %v99_v37 = vsel %vm97_vm0, %v95_v35, %v98_v36  ;;  %v267_v36 = vld [vmem:[#allocation5 + $0x1c0] sm:$0xff] }
  0xb1   :  { %135 = vmatmul.f32.vlgmr.msra.gmra.mxu1 %v99_v37  ;;  %284 = vmatpush.msra.mxu3 %v267_v36 }
  0xb3   :  { %285 = vmatpush.msra.mxu3 %v266_v38 }
  0xb5   :  { %286 = vmatpush.msra.mxu3 %v265_v41 }
 0x12e   :  { %v136_v46 = vpop.f32.mrf.mxu1 }
 0x12f   :  { %v137_v48 = vadd.f32 %v324_v44, %v136_v46  ;;  %v264_v44 = vld [vmem:[#allocation5 + $0x1a8] sm:$0xff] }
 0x130   :  { %287 = vmatpush.msra.mxu3 %v264_v44 }
 0x131   :  { %v141_v50 = vrot.slane %v137_v48, 4  ;;  %v147_v51 = vmul.f32 %v137_v48, %v137_v48 }
 0x132   :  { %288 = vmatpush.msra.mxu3 %v263_v47 }
 0x133   :  { %v142_v53 = vadd.f32 %v141_v50, %v137_v48  ;;  %v148_v54 = vrot.slane %v147_v51, 4  ;;  %v262_v50 = vld [vmem:[#allocation5 + $0x198] sm:$0xff] }
 0x134   :  { %289 = vmatpush.msra.mxu3 %v262_v50 }
 0x135   :  { %v143_v56 = vrot.slane %v142_v53, 2  ;;  %v149_v57 = vadd.f32 %v148_v54, %v147_v51 }
 0x137   :  { %v144_v59 = vadd.f32 %v143_v56, %v142_v53  ;;  %v150_v60 = vrot.slane %v149_v57, 2  ;;  %v261_v53 = vld [vmem:[#allocation5 + $0x190] sm:$0xff]  ;;  %v260_v56 = vld [vmem:[#allocation5 + $0x188] sm:$0xff] }
 0x138   :  { %290 = vmatpush.msra.mxu3 %v261_v53 }
 0x139   :  { %v145_v62 = vrot.slane %v144_v59, 1  ;;  %v151_v63 = vadd.f32 %v150_v60, %v149_v57 }
 0x13a   :  { %291 = vmatpush.msra.mxu3 %v260_v56 }
 0x13b   :  { %v146_v1 = vadd.f32 %v145_v62, %v144_v59  ;;  %v152_v2 = vrot.slane %v151_v63, 1  ;;  %v259_v59 = vld [vmem:[#allocation5 + $0x180] sm:$0xff] }
 0x13c   :  { %292 = vmatpush.msra.mxu3 %v259_v59 }
 0x13d   :  { %v153_v4 = vadd.f32 %v152_v2, %v151_v63  ;;  %v154_v5 = vmul.f32 0.125, %v146_v1 }
 0x13f   :  { %v155_v7 = vmul.f32 0.125, %v153_v4  ;;  %v156_v8 = vmul.f32 %v154_v5, %v154_v5  ;;  %v159_v18 = vsub.f32 %v137_v48, %v154_v5 }
 0x141   :  { %v157_v9 = vsub.f32 %v155_v7, %v156_v8  ;;  %v328_v8 = vld [vmem:[#allocation7 + $0x5] ss:$0 sm:$0xff] }
 0x143   :  { %v158_v10 = vmax.f32 %v157_v9, 0.0 }
 0x145   :  { %v160_v11 = vadd.f32 0.8, %v158_v10 }
 0x147   :  { %331 = vrsqrt.f32 %v160_v11  ;;  %vm167_vm2 = vweird.f32 %v160_v11 }
 0x14d   :  { %v332_v12 = vpop.eup %331 }
 0x14e   :  { %v162_v13 = vmul.f32 %v332_v12, %v160_v11  ;;  %vm168_vm1 = vweird.f32 %v332_v12  ;;  %v329_v11 = vld [vmem:[#allocation7 + $0x6] ss:$0 sm:$0xff] }
 0x14f   :  { %vm169_vm3 = vmor %vm167_vm2, %vm168_vm1 }
 0x150   :  { %v163_v14 = vmul.f32 %v332_v12, %v162_v13 }
 0x152   :  { %v164_v15 = vmul.f32 0.5, %v163_v14 }
 0x154   :  { %v165_v16 = vsub.f32 1.5, %v164_v15 }
 0x156   :  { %v166_v17 = vmul.f32 %v332_v12, %v165_v16  ;;  %v330_v16 = vld [vmem:[#allocation7 + $0x7] ss:$0 sm:$0xff] }
 0x158   :  { %v170_v20 = vsel %vm169_vm3, %v332_v12, %v166_v17 }
 0x159   :  { %v171_v21 = vmul.f32 %v170_v20, %v159_v18 }
 0x15b   :  { %v173_v23 = vmul.f32 %v325_v19, %v171_v21 }
 0x15d   :  { %v175_v24 = vadd.f32 %v326_v22, %v173_v23 }
 0x15f   :  { %vm176_vm4 = vcmp.gt.f32.partialorder %v175_v24, 0.0  ;;  %v177_v25 = vmul.f32 0.2, %v175_v24 }
 0x161   :  { %v178_v26 = vsel %vm176_vm4, %v175_v24, %v177_v25 }
 0x162   :  { %214 = vmatmul.f32.vlgmr.msra.gmra.mxu2 %v178_v26 }
 0x1e5   :  { %v215_v35 = vpop.f32.mrf.mxu2 }
 0x1e6   :  { %v216_v37 = vadd.f32 %v327_v33, %v215_v35 }
 0x1e8   :  { %v220_v39 = vrot.slane %v216_v37, 4  ;;  %v226_v40 = vmul.f32 %v216_v37, %v216_v37 }
 0x1ea   :  { %v221_v42 = vadd.f32 %v220_v39, %v216_v37  ;;  %v227_v43 = vrot.slane %v226_v40, 4 }
 0x1ec   :  { %v222_v45 = vrot.slane %v221_v42, 2  ;;  %v228_v46 = vadd.f32 %v227_v43, %v226_v40 }
 0x1ee   :  { %v223_v48 = vadd.f32 %v222_v45, %v221_v42  ;;  %v229_v49 = vrot.slane %v228_v46, 2 }
 0x1f0   :  { %v224_v51 = vrot.slane %v223_v48, 1  ;;  %v230_v52 = vadd.f32 %v229_v49, %v228_v46 }
 0x1f2   :  { %v225_v54 = vadd.f32 %v224_v51, %v223_v48  ;;  %v231_v55 = vrot.slane %v230_v52, 1 }
 0x1f4   :  { %v232_v57 = vadd.f32 %v231_v55, %v230_v52  ;;  %v233_v58 = vmul.f32 0.125, %v225_v54 }
 0x1f6   :  { %v234_v60 = vmul.f32 0.125, %v232_v57  ;;  %v235_v61 = vmul.f32 %v233_v58, %v233_v58  ;;  %v238_v7 = vsub.f32 %v216_v37, %v233_v58 }
 0x1f8   :  { %v236_v62 = vsub.f32 %v234_v60, %v235_v61 }
 0x1fa   :  { %v237_v63 = vmax.f32 %v236_v62, 0.0 }
 0x1fc   :  { %v239_v0 = vadd.f32 0.8, %v237_v63 }
 0x1fe   :  { %333 = vrsqrt.f32 %v239_v0  ;;  %vm246_vm6 = vweird.f32 %v239_v0 }
 0x204   :  { %v334_v1 = vpop.eup %333 }
 0x205   :  { %v241_v2 = vmul.f32 %v334_v1, %v239_v0  ;;  %vm247_vm5 = vweird.f32 %v334_v1 }
 0x206   :  { %vm248_vm7 = vmor %vm246_vm6, %vm247_vm5 }
 0x207   :  { %v242_v3 = vmul.f32 %v334_v1, %v241_v2 }
 0x209   :  { %v243_v4 = vmul.f32 0.5, %v242_v3 }
 0x20b   :  { %v244_v5 = vsub.f32 1.5, %v243_v4 }
 0x20d   :  { %v245_v6 = vmul.f32 %v334_v1, %v244_v5 }
 0x20f   :  { %v249_v9 = vsel %vm248_vm7, %v334_v1, %v245_v6 }
 0x210   :  { %v250_v10 = vmul.f32 %v249_v9, %v238_v7 }
 0x212   :  { %v252_v12 = vmul.f32 %v328_v8, %v250_v10 }
 0x214   :  { %v254_v13 = vadd.f32 %v329_v11, %v252_v12 }
 0x216   :  { %vm255_vm8 = vcmp.gt.f32.partialorder %v254_v13, 0.0  ;;  %v256_v14 = vmul.f32 0.2, %v254_v13 }
 0x218   :  { %v257_v15 = vsel %vm255_vm8, %v254_v13, %v256_v14 }
 0x219   :  { %293 = vmatmul.f32.vlgmr.msra.gmra.mxu3 %v257_v15 }
 0x29c   :  { %v294_v17 = vpop.f32.mrf.mxu3 }
 0x29d   :  { %v295_v18 = vadd.f32 %v330_v16, %v294_v17 }
 0x29f   :  { %335 = vtanh.f32 %v295_v18 }
 0x2a5   :  { %v336_v19 = vpop.eup %335 }
 0x2a6   :  { %298 = vst [vmem:[#allocation8] sm:$0xff] %v336_v19 }
 0x2a7   :  { %309 = dma.vmem_to_hbm [thread:$0]  %s305_s2, 128, %s307_s30, [#allocation4]  }
 0x2a8   :  { %437 = dma.done.wait [#allocation4], 128  }
 0x2a9   :  { %438 = vsyncadd [#allocation4], 4294967168 }
 0x2aa   :  { %314 = vsyncpa [#allocation3], 1 }
 0x2ab   :  { %315 = vsyncpa [#allocation6], 1 }
 0x2ac   :  { %316 = vsyncpa [#allocation4], 1 }

</bundles_post_ra>
